<compile_context>
chip_gen: v6e
topology: v6e:2x2x1
jax: 0.10.0
libtpu: 0.0.40
codegen_flags: <defaults>
</compile_context>

<pallas_src>
import functools

import jax
import jax.numpy as jnp
from jax.experimental import pallas as pl
from jax.experimental.pallas import tpu as pltpu


def _round_up(x, m):
    return (x + m - 1) // m * m


def _sublane(dtype):
    return {4: 8, 2: 16, 1: 32}.get(jnp.dtype(dtype).itemsize, 8)


def _vmem_budget_bytes():
    """Scoped VMEM budget with headroom, per TPU generation."""
    cap = 64 * 1024 * 1024
    try:
        info = pltpu.get_tpu_info()
        cap = int(getattr(info, "vmem_capacity_bytes", cap))
    except Exception:
        pass
    # 128 MiB parts (v5e/v6e) -> ~100 MiB; 64 MiB parts (v7x) -> ~51 MiB.
    return max(16 * 1024 * 1024, min(int(cap * 0.8), 100 * 1024 * 1024))


# ----------------------------- shared LN math --------------------------------

def _layernorm_rows(x, gamma, beta, eps):
    """LayerNorm over the last axis of an f32 (tm, d) tile. Stats in f32."""
    d = x.shape[-1]
    inv_d = 1.0 / d
    mean = jnp.sum(x, axis=-1, keepdims=True) * inv_d
    meansq = jnp.sum(x * x, axis=-1, keepdims=True) * inv_d
    var = jnp.maximum(meansq - mean * mean, 0.0)     # no lane mask needed
    inv = jax.lax.rsqrt(var + eps)                   # EUP transcendental
    return (x - mean) * inv * gamma + beta


# --------------------- fused PreNorm + Linear kernels -------------------------

def _prenorm_linear_resident_kernel(x_ref, g_ref, b_ref, w_ref, bias_ref,
                                    o_ref, *, eps):
    # Whole weight (d, d_out) resident in VMEM; 1-D grid over row tiles.
    x = x_ref[...].astype(jnp.float32)
    y = _layernorm_rows(x, g_ref[...].astype(jnp.float32),
                        b_ref[...].astype(jnp.float32), eps)
    acc = jnp.dot(y.astype(w_ref.dtype), w_ref[...],
                  preferred_element_type=jnp.float32)          # MXU, f32 acc
    o_ref[...] = (acc + bias_ref[...].astype(jnp.float32)).astype(o_ref.dtype)


def _prenorm_linear_ntiled_kernel(x_ref, g_ref, b_ref, w_ref, bias_ref,
                                  o_ref, y_ref, *, eps):
    # 2-D grid (row tile i, output-column tile j). LN is computed once per
    # row tile (j == 0) into the VMEM scratch y_ref and reused for all j.
    @pl.when(pl.program_id(1) == 0)
    def _():
        x = x_ref[...].astype(jnp.float32)
        y = _layernorm_rows(x, g_ref[...].astype(jnp.float32),
                            b_ref[...].astype(jnp.float32), eps)
        y_ref[...] = y.astype(y_ref.dtype)

    acc = jnp.dot(y_ref[...], w_ref[...],
                  preferred_element_type=jnp.float32)
    o_ref[...] = (acc + bias_ref[...].astype(jnp.float32)).astype(o_ref.dtype)


def _fused_tiles(n, d, d_out, x_dtype, w_dtype, mxu_dtype, out_dtype, budget):
    """Pick (tm, tn) for the fused kernel from the VMEM budget."""
    x_isz = jnp.dtype(x_dtype).itemsize
    w_isz = jnp.dtype(w_dtype).itemsize
    m_isz = jnp.dtype(mxu_dtype).itemsize
    o_isz = jnp.dtype(out_dtype).itemsize
    sub = _sublane(x_dtype)
    tm_cap = max(sub, min(512, _round_up(n, sub)))

    def fits(tm, tn, w_bufs):
        w_bytes = d * tn * w_isz * w_bufs            # weight buffers
        x_bytes = 2 * tm * d * x_isz                 # double-buffered x tile
        o_bytes = 2 * tm * tn * o_isz                # double-buffered out tile
        y_bytes = tm * d * (m_isz + 12)              # y scratch + f32 temps
        small = 8 * d * 4 + 8 * tn * 4               # gamma/beta/bias
        return w_bytes + x_bytes + o_bytes + y_bytes + small <= budget

    # Path 1: whole weight resident -> single N block, W DMA'd exactly once.
    tm = tm_cap
    while tm > sub and not fits(tm, d_out, 1):
        tm -= sub
    if fits(tm, d_out, 1):
        return tm, d_out

    # Path 2: tile the output columns (lane-dense multiples of 128).
    tn = min(512, _round_up(d_out, 128))
    while tn > 128 and not fits(sub, tn, 2):
        tn -= 128
    tm = tm_cap
    while tm > sub and not fits(tm, tn, 2):
        tm -= sub
    return max(tm, sub), tn


def pre_norm_linear(x, gamma, beta, w, bias, *, eps=1e-5, mxu_dtype=None,
                    tm=None, tn=None):
    """Fused PreNorm(dim, Linear(dim, d_out)): Linear(LayerNorm(x)).

    x: (..., d); gamma/beta: (d,); w: (d, d_out); bias: (d_out,).
    Pass bf16 weights (or mxu_dtype=jnp.bfloat16) for the bf16-native MXU path.
    """
    orig_shape = x.shape
    d = orig_shape[-1]
    d_out = w.shape[1]
    x2d = x.reshape(-1, d)
    n = x2d.shape[0]
    out_dtype = x.dtype

    if mxu_dtype is None:
        # Follow the weight dtype: bf16 params -> bf16 MXU; f32 stays exact.
        mxu_dtype = w.dtype
    w_in = w if w.dtype == mxu_dtype else w.astype(mxu_dtype)

    budget = _vmem_budget_bytes()
    sub = _sublane(x.dtype)
    tm_auto, tn_auto = _fused_tiles(n, d, d_out, x.dtype, w_in.dtype,
                                    mxu_dtype, out_dtype, budget)
    tm_eff = tm_auto if tm is None else max(
        sub, (min(int(tm), _round_up(n, sub)) // sub) * sub)
    tn_eff = tn_auto if tn is None else int(tn)
    if tn_eff < d_out:
        tn_eff = max(128, (tn_eff // 128) * 128)     # lane-dense N tiles

    grid_i = pl.cdiv(n, tm_eff)
    grid_j = pl.cdiv(d_out, tn_eff)

    g2d = gamma.reshape(1, d)
    b2d = beta.reshape(1, d)
    bias2d = bias.reshape(1, d_out)

    if grid_j == 1:
        out = pl.pallas_call(
            functools.partial(_prenorm_linear_resident_kernel, eps=eps),
            out_shape=jax.ShapeDtypeStruct((n, d_out), out_dtype),
            grid_spec=pltpu.PrefetchScalarGridSpec(
                num_scalar_prefetch=0,
                grid=(grid_i,),
                in_specs=[
                    pl.BlockSpec((tm_eff, d), lambda i: (i, 0)),      # x rows
                    pl.BlockSpec((1, d), lambda i: (0, 0)),           # gamma
                    pl.BlockSpec((1, d), lambda i: (0, 0)),           # beta
                    pl.BlockSpec((d, d_out), lambda i: (0, 0)),       # W (resident)
                    pl.BlockSpec((1, d_out), lambda i: (0, 0)),       # bias
                ],
                out_specs=pl.BlockSpec((tm_eff, d_out), lambda i: (i, 0)),
            ),
            compiler_params=pltpu.CompilerParams(
                dimension_semantics=("parallel",),
                vmem_limit_bytes=budget,
            ),
        )(x2d, g2d, b2d, w_in, bias2d)
    else:
        out = pl.pallas_call(
            functools.partial(_prenorm_linear_ntiled_kernel, eps=eps),
            out_shape=jax.ShapeDtypeStruct((n, d_out), out_dtype),
            grid_spec=pltpu.PrefetchScalarGridSpec(
                num_scalar_prefetch=0,
                grid=(grid_i, grid_j),
                in_specs=[
                    pl.BlockSpec((tm_eff, d), lambda i, j: (i, 0)),   # x rows
                    pl.BlockSpec((1, d), lambda i, j: (0, 0)),        # gamma
                    pl.BlockSpec((1, d), lambda i, j: (0, 0)),        # beta
                    pl.BlockSpec((d, tn_eff), lambda i, j: (0, j)),   # W column tile
                    pl.BlockSpec((1, tn_eff), lambda i, j: (0, j)),   # bias tile
                ],
                out_specs=pl.BlockSpec((tm_eff, tn_eff), lambda i, j: (i, j)),
                scratch_shapes=[pltpu.VMEM((tm_eff, d), mxu_dtype)],  # cached LN
            ),
            compiler_params=pltpu.CompilerParams(
                # j carries the cached-LN state -> must be "arbitrary".
                dimension_semantics=("parallel", "arbitrary"),
                vmem_limit_bytes=budget,
            ),
        )(x2d, g2d, b2d, w_in, bias2d)

    return out.reshape(orig_shape[:-1] + (d_out,))


# --------------------- standalone LayerNorm kernel ----------------------------
# Used by the generic PreNorm wrapper when `fn` is an arbitrary JAX callable.

def _layernorm_kernel(x_ref, g_ref, b_ref, o_ref, *, eps):
    x = x_ref[...].astype(jnp.float32)
    y = _layernorm_rows(x, g_ref[...].astype(jnp.float32),
                        b_ref[...].astype(jnp.float32), eps)
    o_ref[...] = y.astype(o_ref.dtype)


def layer_norm(x, gamma, beta, *, eps=1e-5, tm=None):
    """LayerNorm over the last axis of x (any leading shape). No pad copies."""
    orig_shape = x.shape
    d = orig_shape[-1]
    x2d = x.reshape(-1, d)
    n = x2d.shape[0]

    budget = _vmem_budget_bytes()
    sub = _sublane(x.dtype)
    if tm is None:
        x_isz = jnp.dtype(x.dtype).itemsize
        bytes_per_row = d * (4 * x_isz + 12) + 64   # in/out dbl-buf + f32 temps
        tm = max(sub, budget // bytes_per_row)
    tm_eff = max(sub, min((int(tm) // sub) * sub, 1024, _round_up(n, sub)))
    grid_i = pl.cdiv(n, tm_eff)

    out = pl.pallas_call(
        functools.partial(_layernorm_kernel, eps=eps),
        out_shape=jax.ShapeDtypeStruct((n, d), x.dtype),
        grid_spec=pltpu.PrefetchScalarGridSpec(
            num_scalar_prefetch=0,
            grid=(grid_i,),
            in_specs=[
                pl.BlockSpec((tm_eff, d), lambda i: (i, 0)),
                pl.BlockSpec((1, d), lambda i: (0, 0)),
                pl.BlockSpec((1, d), lambda i: (0, 0)),
            ],
            out_specs=pl.BlockSpec((tm_eff, d), lambda i: (i, 0)),
        ),
        compiler_params=pltpu.CompilerParams(
            dimension_semantics=("parallel",),
            vmem_limit_bytes=budget,
        ),
    )(x2d, gamma.reshape(1, d), beta.reshape(1, d))

    return out.reshape(orig_shape)


def pre_norm(x, gamma, beta, fn, *, eps=1e-5, **kwargs):
    """Exact PreNorm.forward semantics for an arbitrary fn: fn(LN(x), **kwargs)."""
    return fn(layer_norm(x, gamma, beta, eps=eps), **kwargs)


# ----------------------------------- main -------------------------------------

if __name__ == "__main__":
    key = jax.random.PRNGKey(0)

    def ln_ref(x, g, b, eps=1e-5):
        mean = jnp.mean(x, axis=-1, keepdims=True)
        var = jnp.mean((x - mean) ** 2, axis=-1, keepdims=True)
        return (x - mean) / jnp.sqrt(var + eps) * g + b

    # ---- Test 1: resident-weight fused path, f32, exact vs reference -------
    batch, seq, dim = 2, 8, 32
    k_x, k_w, k_b, k_x2, k_w2, k_b2 = jax.random.split(key, 6)
    x = jax.random.normal(k_x, (batch, seq, dim), dtype=jnp.float32)
    gamma = jnp.ones((dim,), jnp.float32)     # nn.LayerNorm default init
    beta = jnp.zeros((dim,), jnp.float32)
    w = jax.random.normal(k_w, (dim, dim), dtype=jnp.float32) * 0.02
    b = jax.random.normal(k_b, (dim,), dtype=jnp.float32) * 0.02

    out = jax.block_until_ready(pre_norm_linear(x, gamma, beta, w, b))
    ref = jnp.einsum("bsd,de->bse", ln_ref(x, gamma, beta), w) + b
    assert out.shape == (batch, seq, dim)
    assert jnp.allclose(out, ref, atol=1e-4, rtol=1e-4)

    # Generic path: Pallas LayerNorm kernel + arbitrary JAX `fn`.
    fn = lambda y: jnp.einsum("bsd,de->bse", y, w) + b
    out_generic = jax.block_until_ready(pre_norm(x, gamma, beta, fn))
    assert jnp.allclose(out_generic, ref, atol=1e-4, rtol=1e-4)

    # ---- Test 2: N-tiled path (scratch-cached LN), ragged rows, bf16 MXU ---
    n2, d2, dout2 = 40, 64, 256
    x2 = jax.random.normal(k_x2, (n2, d2), jnp.float32)
    g2 = 1.0 + 0.1 * jax.random.normal(jax.random.PRNGKey(1), (d2,), jnp.float32)
    b2 = 0.1 * jax.random.normal(jax.random.PRNGKey(2), (d2,), jnp.float32)
    w2 = (0.05 * jax.random.normal(k_w2, (d2, dout2), jnp.float32)
          ).astype(jnp.bfloat16)
    bias2 = 0.05 * jax.random.normal(k_b2, (dout2,), jnp.float32)

    out2 = jax.block_until_ready(
        pre_norm_linear(x2, g2, b2, w2, bias2, tm=16, tn=128))
    ref2 = jnp.dot(ln_ref(x2, g2, b2), w2.astype(jnp.float32)) + bias2
    assert out2.shape == (n2, dout2)
    assert jnp.allclose(out2, ref2, atol=5e-2, rtol=5e-2)

    print("KERNEL_OK")
</pallas_src>

<mosaic_0001>
module attributes {stable_mosaic.version = 11 : i64} {
  func.func @_prenorm_linear_resident_kernel(%arg0: i32, %arg1: memref<16x32xf32, #tpu.memory_space<vmem>>, %arg2: memref<1x32xf32, #tpu.memory_space<vmem>>, %arg3: memref<1x32xf32, #tpu.memory_space<vmem>>, %arg4: memref<32x32xf32, #tpu.memory_space<vmem>>, %arg5: memref<1x32xf32, #tpu.memory_space<vmem>>, %arg6: memref<16x32xf32, #tpu.memory_space<vmem>>) attributes {dimension_semantics = [#tpu.dimension_semantics<parallel>], iteration_bounds = array<i64: 1>, scalar_prefetch = 0 : i64, scratch_operands = 0 : i64, tpu.core_type = #tpu.core_type<tc>, window_params = [{transform_indices = @transform_0, window_bounds = array<i64: 16, 32>}, {pipeline_mode = #tpu.pipeline_mode<synchronous>, transform_indices = @transform_1, window_bounds = array<i64: 1, 32>}, {pipeline_mode = #tpu.pipeline_mode<synchronous>, transform_indices = @transform_2, window_bounds = array<i64: 1, 32>}, {pipeline_mode = #tpu.pipeline_mode<synchronous>, transform_indices = @transform_3, window_bounds = array<i64: 32, 32>}, {pipeline_mode = #tpu.pipeline_mode<synchronous>, transform_indices = @transform_4, window_bounds = array<i64: 1, 32>}, {transform_indices = @transform_5, window_bounds = array<i64: 16, 32>}]} {
    %c0 = arith.constant 0 : index
    %c0_0 = arith.constant 0 : index
    %0 = vector.load %arg1[%c0, %c0_0] : memref<16x32xf32, #tpu.memory_space<vmem>>, vector<16x32xf32>
    %c0_1 = arith.constant 0 : index
    %c0_2 = arith.constant 0 : index
    %1 = vector.load %arg2[%c0_1, %c0_2] : memref<1x32xf32, #tpu.memory_space<vmem>>, vector<1x32xf32>
    %c0_3 = arith.constant 0 : index
    %c0_4 = arith.constant 0 : index
    %2 = vector.load %arg3[%c0_3, %c0_4] : memref<1x32xf32, #tpu.memory_space<vmem>>, vector<1x32xf32>
    %cst = arith.constant dense<0.000000e+00> : vector<16xf32>
    %3 = vector.multi_reduction <add>, %0, %cst [1] : vector<16x32xf32> to vector<16xf32>
    %4 = vector.shape_cast %3 : vector<16xf32> to vector<16x1xf32>
    %cst_5 = arith.constant 3.125000e-02 : f32
    %5 = vector.broadcast %cst_5 : f32 to vector<16x1xf32>
    %6 = arith.mulf %4, %5 : vector<16x1xf32>
    %7 = arith.mulf %0, %0 : vector<16x32xf32>
    %cst_6 = arith.constant dense<0.000000e+00> : vector<16xf32>
    %8 = vector.multi_reduction <add>, %7, %cst_6 [1] : vector<16x32xf32> to vector<16xf32>
    %9 = vector.shape_cast %8 : vector<16xf32> to vector<16x1xf32>
    %cst_7 = arith.constant 3.125000e-02 : f32
    %10 = vector.broadcast %cst_7 : f32 to vector<16x1xf32>
    %11 = arith.mulf %9, %10 : vector<16x1xf32>
    %12 = arith.mulf %6, %6 : vector<16x1xf32>
    %13 = arith.subf %11, %12 : vector<16x1xf32>
    %cst_8 = arith.constant 0.000000e+00 : f32
    %14 = vector.broadcast %cst_8 : f32 to vector<16x1xf32>
    %15 = arith.maximumf %13, %14 : vector<16x1xf32>
    %cst_9 = arith.constant 9.99999974E-6 : f32
    %16 = vector.broadcast %cst_9 : f32 to vector<16x1xf32>
    %17 = arith.addf %15, %16 : vector<16x1xf32>
    %18 = math.rsqrt %17 : vector<16x1xf32>
    %19 = vector.broadcast %6 : vector<16x1xf32> to vector<16x32xf32>
    %20 = arith.subf %0, %19 : vector<16x32xf32>
    %21 = vector.broadcast %18 : vector<16x1xf32> to vector<16x32xf32>
    %22 = arith.mulf %20, %21 : vector<16x32xf32>
    %23 = vector.broadcast %1 : vector<1x32xf32> to vector<16x32xf32>
    %24 = arith.mulf %22, %23 : vector<16x32xf32>
    %25 = vector.broadcast %2 : vector<1x32xf32> to vector<16x32xf32>
    %26 = arith.addf %24, %25 : vector<16x32xf32>
    %c0_10 = arith.constant 0 : index
    %c0_11 = arith.constant 0 : index
    %27 = vector.load %arg4[%c0_10, %c0_11] : memref<32x32xf32, #tpu.memory_space<vmem>>, vector<32x32xf32>
    %cst_12 = arith.constant dense<0.000000e+00> : vector<16x32xf32>
    %28 = tpu.matmul %26, %27, %cst_12 {dimension_numbers = #tpu.dot_dimension_numbers<[1], [0], [0], [1], [0, 0, 1, 1], [], []>} : vector<16x32xf32>, vector<32x32xf32>, vector<16x32xf32> -> vector<16x32xf32>
    %c0_13 = arith.constant 0 : index
    %c0_14 = arith.constant 0 : index
    %29 = vector.load %arg5[%c0_13, %c0_14] : memref<1x32xf32, #tpu.memory_space<vmem>>, vector<1x32xf32>
    %30 = vector.broadcast %29 : vector<1x32xf32> to vector<16x32xf32>
    %31 = arith.addf %28, %30 : vector<16x32xf32>
    %c0_15 = arith.constant 0 : index
    %c0_16 = arith.constant 0 : index
    %32 = vector.load %arg6[%c0_15, %c0_16] : memref<16x32xf32, #tpu.memory_space<vmem>>, vector<16x32xf32>
    tpu.vector_store %arg6[%c0_15, %c0_16], %31 {strides = array<i32>} : memref<16x32xf32, #tpu.memory_space<vmem>>, vector<16x32xf32>,
    return
  }
  func.func @transform_0(%arg0: i32) -> (i32, i32) {
    %c0_i32 = arith.constant 0 : i32
    %c0_i32_0 = arith.constant 0 : i32
    return %arg0, %c0_i32 : i32, i32
  }
  func.func @transform_1(%arg0: i32) -> (i32, i32) {
    %c0_i32 = arith.constant 0 : i32
    %c0_i32_0 = arith.constant 0 : i32
    %c0_i32_1 = arith.constant 0 : i32
    return %c0_i32, %c0_i32_0 : i32, i32
  }
  func.func @transform_2(%arg0: i32) -> (i32, i32) {
    %c0_i32 = arith.constant 0 : i32
    %c0_i32_0 = arith.constant 0 : i32
    %c0_i32_1 = arith.constant 0 : i32
    return %c0_i32, %c0_i32_0 : i32, i32
  }
  func.func @transform_3(%arg0: i32) -> (i32, i32) {
    %c0_i32 = arith.constant 0 : i32
    %c0_i32_0 = arith.constant 0 : i32
    %c0_i32_1 = arith.constant 0 : i32
    return %c0_i32, %c0_i32_0 : i32, i32
  }
  func.func @transform_4(%arg0: i32) -> (i32, i32) {
    %c0_i32 = arith.constant 0 : i32
    %c0_i32_0 = arith.constant 0 : i32
    %c0_i32_1 = arith.constant 0 : i32
    return %c0_i32, %c0_i32_0 : i32, i32
  }
  func.func @transform_5(%arg0: i32) -> (i32, i32) {
    %c0_i32 = arith.constant 0 : i32
    %c0_i32_0 = arith.constant 0 : i32
    return %arg0, %c0_i32 : i32, i32
  }
}

</mosaic_0001>

<bundles_post_ra>
// kernel: tpu_custom_call.1
= control target key start
LH: loop header
LB: loop body
LE: loop exit
PB: predicated region body
PF: predicated region fallthrough
CT: control target
= control target key end

     0   :  { %10 = vsyncpa [#allocation3], 0  ;;  %s381_s0 = inlined_call_operand.hbm [shape: f32[16,32], index: 0, kind: input, shape index: {}]   ;;  %s382_s1 = inlined_call_operand.vmem [shape: f32[1,32], index: 1, kind: input, shape index: {}]   ;;  %s383_s2 = inlined_call_operand.vmem [shape: f32[1,32], index: 2, kind: input, shape index: {}]   ;;  %s384_s3 = inlined_call_operand.hbm [shape: f32[32,32], index: 3, kind: input, shape index: {}]   ;;  %s385_s4 = inlined_call_operand.vmem [shape: f32[1,32], index: 4, kind: input, shape index: {}]   ;;  %s386_s5 = inlined_call_operand.hbm [shape: f32[16,32], index: 5, kind: output, shape index: {}]  }
   0x1   :  { %11 = vsyncpa [#allocation6], 0 }
   0x2   :  { %12 = vsyncpa [#allocation4], 0  ;;  %s311_s18 = smov [#allocation2]  }
   0x3   :  { %s18_s19 = sshll.u32 %s311_s18, 4  ;;  %s19_s19 = int_to_ptr.vmem [resolvable:$true] %s18_s19 }
   0x4   :  { %s253_s20 = scalar_lea.vmem %s19_s19, 256  ;;  %p258_p1 = scmp.lt.s32.totalorder %s19_s19, %s19_s19 }
   0x5   :  { %p254_p0 = scmp.ne.s32.totalorder %s19_s19, %s253_s20  ;;  %p259_p2 = scmp.lt.s32.totalorder %s253_s20, %s253_s20 }
   0x7   :  { %p260_p3 = por %p259_p2, %p258_p1 }
   0x9   :  { %p261_p4 = pnand %p260_p3, %p254_p0 }
   0xb   :  { %264 = shalt.err (!%p261_p4)
}
   0xc   :  { %s312_s21 = smov 128   ;;  %s313_s22 = smov 8  }
   0xd   :  { %24 = dma.hbm_to_vmem [thread:$0]  %s381_s0, 256, %s19_s19, [#allocation3], %s312_s21, %s312_s21, %s313_s22  }
   0xe   :  { %s314_s25 = smov [#allocation5]  }
   0xf   :  { %s34_s26 = sshll.u32 %s314_s25, 4  ;;  %s35_s26 = int_to_ptr.vmem [resolvable:$true] %s34_s26 }
  0x10   :  { %s273_s27 = scalar_lea.vmem %s35_s26, 512  ;;  %p278_p6 = scmp.lt.s32.totalorder %s35_s26, %s35_s26 }
  0x11   :  { %p274_p5 = scmp.ne.s32.totalorder %s35_s26, %s273_s27  ;;  %p279_p7 = scmp.lt.s32.totalorder %s273_s27, %s273_s27 }
  0x13   :  { %p280_p8 = por %p279_p7, %p278_p6 }
  0x15   :  { %p281_p9 = pnand %p280_p8, %p274_p5 }
  0x17   :  { %284 = shalt.err (!%p281_p9)
}
  0x18   :  { %40 = dma.hbm_to_vmem [thread:$0]  %s384_s3, 512, %s35_s26, [#allocation6], %s312_s21, %s312_s21, %s313_s22  }
  0x19   :  { %305 = dma.done.wait [#allocation3], 256  }
  0x1a   :  { %306 = vsyncadd [#allocation3], 4294967040 }
  0x1b   :  { %307 = dma.done.wait [#allocation6], 512  }
  0x1c   :  { %308 = vsyncadd [#allocation6], 4294966784  ;;  %vm53_vm0 = vcmask 261120   ;;  %v49_v0 = vld [vmem:[#allocation2] sm:$0xff]  ;;  %v50_v1 = vld [vmem:[#allocation2 + $0x8] sm:$0xff] }
  0x1d   :  { %v54_v2 = vsel %vm53_vm0, %v49_v0, 0.0  ;;  %v62_v3 = vmul.f32 %v49_v0, %v49_v0  ;;  %v63_v4 = vmul.f32 %v50_v1, %v50_v1  ;;  %v57_v6 = vsel %vm53_vm0, %v50_v1, 0.0  ;;  %v105_v8 = vld [vmem:[#allocation5 + $0x18] sm:$0xff]  ;;  %v104_v9 = vld [vmem:[#allocation5 + $0x10] sm:$0xff]  ;;  %v103_v10 = vld [vmem:[#allocation5 + $0x8] sm:$0xff] }
  0x1e   :  { %55 = vadd.xlane.f32.xlu0 %v54_v2  ;;  %225 = vmatprep.subr.mxu0 %v105_v8  ;;  %v102_v11 = vld [vmem:[#allocation5] sm:$0xff]  ;;  %v214_v30 = vld [vmem:[%s382_s1] ss:$0 sm:$0xff]  ;;  %s315_s1 = smov [#allocation7]  }
  0x1f   :  { %v64_v5 = vsel %vm53_vm0, %v62_v3, 0.0  ;;  %v67_v7 = vsel %vm53_vm0, %v63_v4, 0.0  ;;  %226 = vmatpush3.msra.mxu0 %v105_v8  ;;  %v215_v32 = vld [vmem:[%s383_s2] ss:$0 sm:$0xff]  ;;  %s201_s9 = sshll.u32 %s315_s1, 4  ;;  %s202_s9 = int_to_ptr.vmem [resolvable:$true] %s201_s9 }
  0x20   :  { %65 = vadd.xlane.f32.xlu1 %v64_v5  ;;  %227 = vmatprep.subr.mxu0 %v104_v9  ;;  %v216_v40 = vld [vmem:[%s385_s4] ss:$0 sm:$0xff]  ;;  %s285_s2 = scalar_lea.vmem %s202_s9, 256  ;;  %p290_p11 = scmp.lt.s32.totalorder %s202_s9, %s202_s9 }
  0x21   :  { %228 = vmatpush3.msra.mxu0 %v104_v9  ;;  %p286_p10 = scmp.ne.s32.totalorder %s202_s9, %s285_s2  ;;  %p291_p12 = scmp.lt.s32.totalorder %s285_s2, %s285_s2 }
  0x22   :  { %58 = vadd.xlane.f32.xlu0 %v57_v6  ;;  %229 = vmatprep.subr.mxu0 %v103_v10 }
  0x23   :  { %230 = vmatpush3.msra.mxu0 %v103_v10  ;;  %p292_p13 = por %p291_p12, %p290_p11 }
  0x24   :  { %68 = vadd.xlane.f32.xlu1 %v67_v7  ;;  %231 = vmatprep.subr.mxu0 %v102_v11 }
  0x25   :  { %232 = vmatpush3.msra.mxu0 %v102_v11  ;;  %p293_p0 = pnand %p292_p13, %p286_p10 }
  0xa7   :  { %v56_v12 = vpop.xlane.xlu0 %55 }
  0xa8   :  { %v60_v13 = vmul.f32 0.03125, %v56_v12 }
  0xa9   :  { %v66_v14 = vpop.xlane.xlu1 %65 }
  0xaa   :  { %v72_v15 = vmul.f32 %v60_v13, %v60_v13  ;;  %v70_v16 = vmul.f32 0.03125, %v66_v14  ;;  %v82_v28 = vsub.f32 %v49_v0, %v60_v13 }
  0xab   :  { %v59_v17 = vpop.xlane.xlu0 %58 }
  0xac   :  { %v74_v18 = vsub.f32 %v70_v16, %v72_v15  ;;  %v61_v19 = vmul.f32 0.03125, %v59_v17 }
  0xad   :  { %v69_v20 = vpop.xlane.xlu1 %68 }
  0xae   :  { %v76_v21 = vmax.f32 %v74_v18, 0.0  ;;  %v73_v22 = vmul.f32 %v61_v19, %v61_v19  ;;  %v71_v23 = vmul.f32 0.03125, %v69_v20  ;;  %v83_v33 = vsub.f32 %v50_v1, %v61_v19 }
  0xb0   :  { %v78_v24 = vadd.f32 1e-05, %v76_v21  ;;  %v75_v25 = vsub.f32 %v71_v23, %v73_v22 }
  0xb2   :  { %241 = vrsqrt.f32 %v78_v24  ;;  %v77_v26 = vmax.f32 %v75_v25, 0.0 }
  0xb4   :  { %v79_v27 = vadd.f32 1e-05, %v77_v26 }
  0xb6   :  { %243 = vrsqrt.f32 %v79_v27 }
  0xbf   :  { %v242_v29 = vpop.eup %241 }
  0xc0   :  { %v84_v31 = vmul.f32 %v242_v29, %v82_v28 }
  0xc2   :  { %v92_v34 = vmul.f32 %v214_v30, %v84_v31 }
  0xc3   :  { %v244_v35 = vpop.eup %243 }
  0xc4   :  { %v85_v36 = vmul.f32 %v244_v35, %v83_v33  ;;  %v100_v37 = vadd.f32 %v215_v32, %v92_v34 }
  0xc6   :  { %v93_v38 = vmul.f32 %v214_v30, %v85_v36  ;;  %233 = vmatprep.mubr.msk.f32.mxu0 %vm53_vm0, %v100_v37 }
  0xc8   :  { %v101_v39 = vadd.f32 %v215_v32, %v93_v38 }
  0xca   :  { %234 = vmatmul.mubr.msk.f32.vlgmr.msra.gmra.mxu0 %vm53_vm0, %v101_v39 }
 0x18a   :  { %v235_v41 = vpop.f32.mrf.mxu0 }
 0x18b   :  { %v191_v42 = vadd.f32 %v235_v41, %v216_v40 }
 0x18c   :  { %v185_v43 = vpop.f32.mrf.mxu0 }
 0x18d   :  { %195 = vst.msk [vmem:[#allocation7 + $0x8] sm:$0xff] %vm53_vm0, %v191_v42  ;;  %v186_v44 = vadd.f32 %v216_v40, %v185_v43 }
 0x18f   :  { %194 = vst.msk [vmem:[#allocation7] sm:$0xff] %vm53_vm0, %v186_v44 }
 0x190   :  { %296 = shalt.err (!%p293_p0)
}
 0x191   :  { %207 = dma.vmem_to_hbm [thread:$0]  %s202_s9, 256, %s386_s5, [#allocation4], %s312_s21, %s312_s21, %s313_s22  }
 0x192   :  { %309 = dma.done.wait [#allocation4], 256  }
 0x193   :  { %310 = vsyncadd [#allocation4], 4294967040 }
 0x194   :  { %211 = vsyncpa [#allocation3], 1 }
 0x195   :  { %212 = vsyncpa [#allocation6], 1 }
 0x196   :  { %213 = vsyncpa [#allocation4], 1 }

</bundles_post_ra>
